<compile_context>
chip_gen: v5e
topology: v5e:2x2
jax: 0.10.0
libtpu: 0.0.40
codegen_flags: <defaults>
</compile_context>

<pallas_src>
import jax
import jax.numpy as jnp
from jax.experimental import pallas as pl
from jax.experimental.pallas import tpu as pltpu


_ALIGN = 256                 # MXU M-height on v6e/v7x; multiple of 128 lanes
_VMEM_BUDGET = 24 << 20      # conservative: fits v7x (64 MiB phys / 32 MiB scoped)


def _round_up(x, m):
    return ((x + m - 1) // m) * m


def _cdiv(a, b):
    return (a + b - 1) // b


def _vmem_bytes(tb, obs_dim, hidden):
    """Rough VMEM footprint of one pipelined step (double-buffered I/O tiles)."""
    x_tile = 2 * tb * obs_dim * 4                  # f32 input tile, 2 buffers
    out_tile = 2 * tb * 4                          # (1, tb) f32 output row, 2 buffers
    weights = 2 * (obs_dim + hidden) * hidden * 2  # bf16 w1 + w2 (default 2 buffers)
    head = 2 * hidden * 4                          # f32 wl row
    biases = 2 * 2 * hidden * 4                    # f32 b1 + b2
    interm = 4 * tb * hidden * 4                   # h1/h2 + bf16 copies (headroom)
    return x_tile + out_tile + weights + head + biases + interm


def _choose_tile(B, obs_dim, hidden, tile_b):
    """Batch-tile size: big (amortize ~0.35us/step), 256-aligned, VMEM-safe,
    >=2 grid steps for v7x's two TensorCores, minimal padding waste."""
    if B <= _ALIGN:
        # Single tile; block == full (padded) array so the lane (batch) dim of
        # the output does not need to be a multiple of 128.
        return _round_up(B, 8)
    fixed = _vmem_bytes(0, obs_dim, hidden)
    per_row = _vmem_bytes(1, obs_dim, hidden) - fixed
    tb_cap = max(_ALIGN, ((_VMEM_BUDGET - fixed) // per_row) // _ALIGN * _ALIGN)
    tb = min(_round_up(tile_b, _ALIGN), tb_cap)
    # At least 2 grid steps (v7x megacore) and shrink the tile toward B/n_steps
    # so the padded tail is small.
    n_steps = max(2, _cdiv(B, tb))
    return min(tb, _round_up(_cdiv(B, n_steps), _ALIGN))


def _critic_kernel(x_ref, w1_ref, b1_ref, w2_ref, b2_ref, wl_ref, bl_ref, out_ref):
    # Preprocess layer 1: Linear(obs_dim, 128) + ReLU.
    # Weights arrive pre-cast to bf16 (hoisted out of the kernel); only the
    # per-tile activation cast remains here.  f32 accumulation on the MXU.
    h1 = jnp.dot(x_ref[...].astype(jnp.bfloat16), w1_ref[...],
                 preferred_element_type=jnp.float32)
    h1 = jnp.maximum(h1 + b1_ref[...], 0.0)

    # Preprocess layer 2: Linear(128, 128) + ReLU.
    h2 = jnp.dot(h1.astype(jnp.bfloat16), w2_ref[...],
                 preferred_element_type=jnp.float32)
    h2 = jnp.maximum(h2 + b2_ref[...], 0.0)

    # Critic.last: Linear(128, 1), kept in f32, computed as an NT matmul
    # (1,128) x (tb,128)^T on the otherwise-idle MXU.  Result is a lane-dense
    # (1, tb) row -> unmasked vst + dense writeback instead of a (tb, 1)
    # column of masked partial stores.
    v = jax.lax.dot_general(
        wl_ref[...], h2,
        dimension_numbers=(((1,), (1,)), ((), ())),
        preferred_element_type=jnp.float32,
    )
    out_ref[...] = (v + bl_ref[0]).astype(out_ref.dtype)


def critic_forward(s, params, tile_b=1024):
    """s: (B, obs_dim) float32.  Returns (B, 1) state-value."""
    w1, b1, w2, b2, wl, bl = params
    B, obs_dim = s.shape
    hidden = w1.shape[1]

    tb = _choose_tile(B, obs_dim, hidden, tile_b)
    n_tiles = _cdiv(B, tb)
    b_pad = n_tiles * tb
    if b_pad != B:
        s = jnp.pad(s, ((0, b_pad - B), (0, 0)))

    # Hoisted casts: MXU weights -> bf16 once (halves weight DMA + VMEM).
    # Biases and the value head stay f32.
    w1_bf = w1.astype(jnp.bfloat16)
    w2_bf = w2.astype(jnp.bfloat16)
    wl_row = wl.reshape(1, hidden).astype(jnp.float32)   # VMEM (1,128) f32 row
    bl_scalar = bl.reshape(1).astype(jnp.float32)        # scalar bias -> SMEM

    flops = 2 * b_pad * (obs_dim * hidden + hidden * hidden + hidden)
    bytes_accessed = (
        b_pad * obs_dim * 4                      # x
        + (obs_dim + hidden) * hidden * 2        # bf16 w1 + w2
        + (2 * hidden + hidden + 1) * 4          # b1, b2, wl, bl
        + b_pad * 4                              # out
    )
    vmem_needed = _vmem_bytes(tb, obs_dim, hidden)
    vmem_limit = int(max(32 << 20, min(48 << 20, vmem_needed + (8 << 20))))

    out = pl.pallas_call(
        _critic_kernel,
        out_shape=jax.ShapeDtypeStruct((1, b_pad), jnp.float32),
        grid=(n_tiles,),
        in_specs=[
            # x: blocked over the batch, auto double-buffered / pipelined.
            pl.BlockSpec((tb, obs_dim), lambda i: (i, 0)),
            # Weights / biases: constant index_map -> DMA'd once, VMEM-resident.
            # (pipeline_mode=pl.Buffered(1) would drop their second buffer;
            #  left at the default — the VMEM budget above already accounts
            #  for two buffers, so this stays conservative and portable.)
            pl.BlockSpec((obs_dim, hidden), lambda i: (0, 0)),
            pl.BlockSpec((1, hidden), lambda i: (0, 0)),
            pl.BlockSpec((hidden, hidden), lambda i: (0, 0)),
            pl.BlockSpec((1, hidden), lambda i: (0, 0)),
            pl.BlockSpec((1, hidden), lambda i: (0, 0)),
            # Final scalar bias in SMEM (no padded (8,128) VMEM tile).
            pl.BlockSpec(memory_space=pltpu.MemorySpace.SMEM),
        ],
        # Lane-dense output: one (1, tb) row per grid step.
        out_specs=pl.BlockSpec((1, tb), lambda i: (0, i)),
        compiler_params=pltpu.CompilerParams(
            dimension_semantics=("parallel",),
            vmem_limit_bytes=vmem_limit,
        ),
        cost_estimate=pl.CostEstimate(
            flops=flops, bytes_accessed=bytes_accessed, transcendentals=0),
    )(s, w1_bf, b1, w2_bf, b2, wl_row, bl_scalar)

    return out[0, :B].reshape(B, 1)


def make_params(key, obs_dim, hidden=128):
    """Deterministic synthetic parameters (shapes implied by the module)."""
    k1, k2, k3, k4, k5, k6 = jax.random.split(key, 6)
    scale = 0.05
    w1 = scale * jax.random.normal(k1, (obs_dim, hidden), jnp.float32)
    b1 = scale * jax.random.normal(k2, (1, hidden), jnp.float32)
    w2 = scale * jax.random.normal(k3, (hidden, hidden), jnp.float32)
    b2 = scale * jax.random.normal(k4, (1, hidden), jnp.float32)
    wl = scale * jax.random.normal(k5, (hidden, 1), jnp.float32)
    bl = scale * jax.random.normal(k6, (1, 1), jnp.float32)
    return (w1, b1, w2, b2, wl, bl)


def _reference(s, params):
    w1, b1, w2, b2, wl, bl = params
    h1 = jnp.maximum(s @ w1 + b1, 0.0)
    h2 = jnp.maximum(h1 @ w2 + b2, 0.0)
    return h2 @ wl + bl


if __name__ == "__main__":
    key = jax.random.PRNGKey(0)
    k_obs, k_par, k_obs2 = jax.random.split(key, 3)

    OBS_DIM = 16
    params = make_params(k_par, OBS_DIM, hidden=128)

    # Small batch of flattened observations (single-tile path).
    B1 = 8
    s1 = jax.random.normal(k_obs, (B1, OBS_DIM), jnp.float32)
    out1 = jax.block_until_ready(critic_forward(s1, params))
    ref1 = _reference(s1, params)
    assert out1.shape == (B1, 1)
    assert jnp.allclose(out1, ref1, atol=1e-2, rtol=1e-2), (
        f"max abs err {jnp.max(jnp.abs(out1 - ref1))}")

    # Modest batch exercising the multi-step pipelined grid (2 steps -> both
    # TensorCores on v7x) and the padded tail + lane-dense output path.
    B2 = 384
    s2 = jax.random.normal(k_obs2, (B2, OBS_DIM), jnp.float32)
    out2 = jax.block_until_ready(critic_forward(s2, params))
    ref2 = _reference(s2, params)
    assert out2.shape == (B2, 1)
    assert jnp.allclose(out2, ref2, atol=1e-2, rtol=1e-2), (
        f"max abs err {jnp.max(jnp.abs(out2 - ref2))}")

    print("KERNEL_OK")
</pallas_src>

<mosaic_0001>
module attributes {stable_mosaic.version = 11 : i64} {
  func.func @_critic_kernel(%arg0: i32, %arg1: memref<8x16xf32, #tpu.memory_space<vmem>>, %arg2: memref<16x128xbf16, #tpu.memory_space<vmem>>, %arg3: memref<1x128xf32, #tpu.memory_space<vmem>>, %arg4: memref<128x128xbf16, #tpu.memory_space<vmem>>, %arg5: memref<1x128xf32, #tpu.memory_space<vmem>>, %arg6: memref<1x128xf32, #tpu.memory_space<vmem>>, %arg7: memref<1xf32, #tpu.memory_space<smem>>, %arg8: memref<1x8xf32, #tpu.memory_space<vmem>>) attributes {dimension_semantics = [#tpu.dimension_semantics<parallel>], iteration_bounds = array<i64: 1>, scalar_prefetch = 0 : i64, scratch_operands = 0 : i64, tpu.core_type = #tpu.core_type<tc>, window_params = [{transform_indices = @transform_0, window_bounds = array<i64: 8, 16>}, {pipeline_mode = #tpu.pipeline_mode<synchronous>, transform_indices = @transform_1, window_bounds = array<i64: 16, 128>}, {pipeline_mode = #tpu.pipeline_mode<synchronous>, transform_indices = @transform_2, window_bounds = array<i64: 1, 128>}, {pipeline_mode = #tpu.pipeline_mode<synchronous>, transform_indices = @transform_3, window_bounds = array<i64: 128, 128>}, {pipeline_mode = #tpu.pipeline_mode<synchronous>, transform_indices = @transform_4, window_bounds = array<i64: 1, 128>}, {pipeline_mode = #tpu.pipeline_mode<synchronous>, transform_indices = @transform_5, window_bounds = array<i64: 1, 128>}, {transform_indices = @transform_6, window_bounds = array<i64: 1>}, {transform_indices = @transform_7, window_bounds = array<i64: 1, 8>}]} {
    %c0 = arith.constant 0 : index
    %c0_0 = arith.constant 0 : index
    %0 = vector.load %arg1[%c0, %c0_0] : memref<8x16xf32, #tpu.memory_space<vmem>>, vector<8x16xf32>
    %1 = arith.truncf %0 : vector<8x16xf32> to vector<8x16xbf16>
    %c0_1 = arith.constant 0 : index
    %c0_2 = arith.constant 0 : index
    %2 = vector.load %arg2[%c0_1, %c0_2] : memref<16x128xbf16, #tpu.memory_space<vmem>>, vector<16x128xbf16>
    %cst = arith.constant dense<0.000000e+00> : vector<8x128xf32>
    %3 = tpu.matmul %1, %2, %cst {dimension_numbers = #tpu.dot_dimension_numbers<[1], [0], [0], [1], [0, 0, 1, 1], [], []>} : vector<8x16xbf16>, vector<16x128xbf16>, vector<8x128xf32> -> vector<8x128xf32>
    %c0_3 = arith.constant 0 : index
    %c0_4 = arith.constant 0 : index
    %4 = vector.load %arg3[%c0_3, %c0_4] : memref<1x128xf32, #tpu.memory_space<vmem>>, vector<1x128xf32>
    %5 = vector.broadcast %4 : vector<1x128xf32> to vector<8x128xf32>
    %6 = arith.addf %3, %5 : vector<8x128xf32>
    %cst_5 = arith.constant 0.000000e+00 : f32
    %7 = vector.broadcast %cst_5 : f32 to vector<8x128xf32>
    %8 = arith.maximumf %6, %7 : vector<8x128xf32>
    %9 = arith.truncf %8 : vector<8x128xf32> to vector<8x128xbf16>
    %c0_6 = arith.constant 0 : index
    %c0_7 = arith.constant 0 : index
    %10 = vector.load %arg4[%c0_6, %c0_7] : memref<128x128xbf16, #tpu.memory_space<vmem>>, vector<128x128xbf16>
    %cst_8 = arith.constant dense<0.000000e+00> : vector<8x128xf32>
    %11 = tpu.matmul %9, %10, %cst_8 {dimension_numbers = #tpu.dot_dimension_numbers<[1], [0], [0], [1], [0, 0, 1, 1], [], []>} : vector<8x128xbf16>, vector<128x128xbf16>, vector<8x128xf32> -> vector<8x128xf32>
    %c0_9 = arith.constant 0 : index
    %c0_10 = arith.constant 0 : index
    %12 = vector.load %arg5[%c0_9, %c0_10] : memref<1x128xf32, #tpu.memory_space<vmem>>, vector<1x128xf32>
    %13 = vector.broadcast %12 : vector<1x128xf32> to vector<8x128xf32>
    %14 = arith.addf %11, %13 : vector<8x128xf32>
    %cst_11 = arith.constant 0.000000e+00 : f32
    %15 = vector.broadcast %cst_11 : f32 to vector<8x128xf32>
    %16 = arith.maximumf %14, %15 : vector<8x128xf32>
    %c0_12 = arith.constant 0 : index
    %c0_13 = arith.constant 0 : index
    %17 = vector.load %arg6[%c0_12, %c0_13] : memref<1x128xf32, #tpu.memory_space<vmem>>, vector<1x128xf32>
    %cst_14 = arith.constant dense<0.000000e+00> : vector<1x8xf32>
    %18 = tpu.matmul %17, %16, %cst_14 {dimension_numbers = #tpu.dot_dimension_numbers<[1], [1], [0], [0], [0, 0, 1, 0], [], []>} : vector<1x128xf32>, vector<8x128xf32>, vector<1x8xf32> -> vector<1x8xf32>
    %c0_15 = arith.constant 0 : index
    %19 = memref.load %arg7[%c0_15] : memref<1xf32, #tpu.memory_space<smem>>
    %20 = vector.broadcast %19 : f32 to vector<1x8xf32>
    %21 = arith.addf %18, %20 : vector<1x8xf32>
    %c0_16 = arith.constant 0 : index
    %c0_17 = arith.constant 0 : index
    %22 = vector.load %arg8[%c0_16, %c0_17] : memref<1x8xf32, #tpu.memory_space<vmem>>, vector<1x8xf32>
    tpu.vector_store %arg8[%c0_16, %c0_17], %21 {strides = array<i32>} : memref<1x8xf32, #tpu.memory_space<vmem>>, vector<1x8xf32>,
    return
  }
  func.func @transform_0(%arg0: i32) -> (i32, i32) {
    %c0_i32 = arith.constant 0 : i32
    %c0_i32_0 = arith.constant 0 : i32
    return %arg0, %c0_i32 : i32, i32
  }
  func.func @transform_1(%arg0: i32) -> (i32, i32) {
    %c0_i32 = arith.constant 0 : i32
    %c0_i32_0 = arith.constant 0 : i32
    %c0_i32_1 = arith.constant 0 : i32
    return %c0_i32, %c0_i32_0 : i32, i32
  }
  func.func @transform_2(%arg0: i32) -> (i32, i32) {
    %c0_i32 = arith.constant 0 : i32
    %c0_i32_0 = arith.constant 0 : i32
    %c0_i32_1 = arith.constant 0 : i32
    return %c0_i32, %c0_i32_0 : i32, i32
  }
  func.func @transform_3(%arg0: i32) -> (i32, i32) {
    %c0_i32 = arith.constant 0 : i32
    %c0_i32_0 = arith.constant 0 : i32
    %c0_i32_1 = arith.constant 0 : i32
    return %c0_i32, %c0_i32_0 : i32, i32
  }
  func.func @transform_4(%arg0: i32) -> (i32, i32) {
    %c0_i32 = arith.constant 0 : i32
    %c0_i32_0 = arith.constant 0 : i32
    %c0_i32_1 = arith.constant 0 : i32
    return %c0_i32, %c0_i32_0 : i32, i32
  }
  func.func @transform_5(%arg0: i32) -> (i32, i32) {
    %c0_i32 = arith.constant 0 : i32
    %c0_i32_0 = arith.constant 0 : i32
    %c0_i32_1 = arith.constant 0 : i32
    return %c0_i32, %c0_i32_0 : i32, i32
  }
  func.func @transform_6(%arg0: i32) -> i32 {
    %c0_i32 = arith.constant 0 : i32
    %c0_i32_0 = arith.constant 0 : i32
    return %c0_i32 : i32
  }
  func.func @transform_7(%arg0: i32) -> (i32, i32) {
    %c0_i32 = arith.constant 0 : i32
    %c0_i32_0 = arith.constant 0 : i32
    return %c0_i32, %arg0 : i32, i32
  }
}

</mosaic_0001>

<bundles_post_ra>
// kernel: tpu_custom_call.1
= control target key start
LH: loop header
LB: loop body
LE: loop exit
PB: predicated region body
PF: predicated region fallthrough
CT: control target
= control target key end

     0   :  { %13 = vsyncpa [#allocation4], 0  ;;  %s458_s0 = inlined_call_operand.hbm [shape: f32[8,16], index: 0, kind: input, shape index: {}]   ;;  %s459_s1 = inlined_call_operand.hbm [shape: bf16[16,128], index: 1, kind: input, shape index: {}]   ;;  %s460_s2 = inlined_call_operand.vmem [shape: f32[1,128], index: 2, kind: input, shape index: {}]   ;;  %s461_s3 = inlined_call_operand.hbm [shape: bf16[128,128], index: 3, kind: input, shape index: {}]   ;;  %s462_s4 = inlined_call_operand.vmem [shape: f32[1,128], index: 4, kind: input, shape index: {}]   ;;  %s463_s5 = inlined_call_operand.vmem [shape: f32[1,128], index: 5, kind: input, shape index: {}]   ;;  %s464_s6 = inlined_call_operand.<no memory space> [shape: f32[1], index: 6, kind: input, shape index: {}]   ;;  %s465_s7 = inlined_call_operand.hbm [shape: f32[1,8], index: 7, kind: output, shape index: {}]  }
   0x1   :  { %14 = vsyncpa [#allocation7], 0  ;;  %s31_s26 = sshll.u32 %s459_s1, 4  ;;  %s32_s26 = int_to_ptr.hbm [resolvable:$true] %s31_s26 }
   0x2   :  { %15 = vsyncpa [#allocation5], 0  ;;  %s388_s27 = smov [#allocation6]   ;;  %s21_s8 = sshll.u32 %s458_s0, 4  ;;  %s22_s8 = int_to_ptr.hbm [resolvable:$true] %s21_s8 }
   0x3   :  { %s33_s28 = sshll.u32 %s388_s27, 4  ;;  %s389_s9 = smov 64   ;;  %s34_s28 = int_to_ptr.vmem [resolvable:$true] %s33_s28 }
   0x4   :  { %s390_s10 = smov 4   ;;  %s391_s11 = smov [#allocation3]  }
   0x5   :  { %39 = dma.hbm_to_vmem [thread:$0]  %s32_s26, 128, %s34_s28, [#allocation7], %s389_s9, %s389_s9, %s390_s10  }
   0x6   :  { %s23_s12 = sshll.u32 %s391_s11, 4  ;;  %s46_s15 = sshll.u32 %s461_s3, 4  ;;  %s24_s12 = int_to_ptr.vmem [resolvable:$true] %s23_s12  ;;  %s47_s15 = int_to_ptr.hbm [resolvable:$true] %s46_s15 }
   0x7   :  { %26 = dma.hbm_to_vmem [thread:$0]  %s22_s8, 128, %s24_s12, [#allocation4]  }
   0x8   :  { %s392_s1 = smov [#allocation8]  }
   0x9   :  { %s48_s16 = sshll.u32 %s392_s1, 4  ;;  %s49_s16 = int_to_ptr.vmem [resolvable:$true] %s48_s16 }
   0xa   :  { %54 = dma.hbm_to_vmem [thread:$0]  %s47_s15, 1024, %s49_s16, [#allocation7], %s389_s9, %s389_s9, %s390_s10  }
   0xb   :  { %382 = dma.done.wait [#allocation4], 128  }
   0xc   :  { %383 = vsyncadd [#allocation4], 4294967168 }
   0xd   :  { %384 = dma.done.wait [#allocation7], 1152  }
   0xe   :  { %385 = vsyncadd [#allocation7], 4294966144  ;;  %v269_v0 = vld [vmem:[#allocation6] sm:$0xff]  ;;  %v74_v1 = vld [vmem:[#allocation3] sm:$0xff]  ;;  %vm88_vm0 = vcmask 130048   ;;  %v191_v23 = vstv %s464_s6  ;;  %s393_s22 = smov [#allocation9]  }
   0xf   :  { %v277_v2 = vld [vmem:[#allocation8 + $0x38] sm:$0xff]  ;;  %v75_v3 = vpack.c.bf16 %v74_v1, %v74_v1  ;;  %99 = vmatpush.bf16.msra.mxu0 %v269_v0  ;;  %v276_v4 = vld [vmem:[#allocation8 + $0x30] sm:$0xff]  ;;  %v275_v5 = vld [vmem:[#allocation8 + $0x28] sm:$0xff]  ;;  %s219_s23 = sshll.u32 %s393_s22, 4  ;;  %vm212_vm1 = vcmask 57344   ;;  %s220_s23 = int_to_ptr.vmem [resolvable:$true] %s219_s23 }
  0x10   :  { %175 = vmatpush.bf16.msra.mxu1 %v277_v2  ;;  %v274_v6 = vld [vmem:[#allocation8 + $0x20] sm:$0xff]  ;;  %v273_v7 = vld [vmem:[#allocation8 + $0x18] sm:$0xff]  ;;  %v272_v8 = vld [vmem:[#allocation8 + $0x10] sm:$0xff] }
  0x11   :  { %v271_v9 = vld [vmem:[#allocation8 + $0x8] sm:$0xff]  ;;  %v270_v10 = vld [vmem:[#allocation8] sm:$0xff]  ;;  %v284_v11 = vld [vmem:[%s460_s2] ss:$0 sm:$0xff] }
  0x12   :  { %236 = vmatmul.msk.bf16.vlgmr.msra.gmra.mxu0 %vm88_vm0, %v75_v3  ;;  %v285_v17 = vld [vmem:[%s462_s4] ss:$0 sm:$0xff]  ;;  %s221_s4 = sshll.u32 %s465_s7, 4  ;;  %s222_s4 = int_to_ptr.hbm [resolvable:$true] %s221_s4 }
  0x13   :  { %v189_v21 = vld [vmem:[%s463_s5] sm:$0x1] }
  0x14   :  { %176 = vmatpush.bf16.msra.mxu1 %v276_v4 }
  0x18   :  { %177 = vmatpush.bf16.msra.mxu1 %v275_v5 }
  0x1c   :  { %178 = vmatpush.bf16.msra.mxu1 %v274_v6 }
  0x20   :  { %179 = vmatpush.bf16.msra.mxu1 %v273_v7 }
  0x24   :  { %180 = vmatpush.bf16.msra.mxu1 %v272_v8 }
  0x28   :  { %181 = vmatpush.bf16.msra.mxu1 %v271_v9 }
  0x2c   :  { %182 = vmatpush.bf16.msra.mxu1 %v270_v10 }
  0x8f   :  { %v101_v12 = vpop.f32.mrf.mxu0 }
  0x90   :  { %v102_v13 = vadd.f32 %v284_v11, %v101_v12 }
  0x92   :  { %v105_v14 = vmax.f32 %v102_v13, 0.0 }
  0x94   :  { %v106_v15 = vpack.c.bf16 %v105_v14, %v105_v14 }
  0x96   :  { %183 = vmatmul.bf16.vlgmr.msra.gmra.mxu1 %v106_v15 }
  0x97   :  { %v103_v16 = vpop.f32.mrf.mxu0 }
 0x113   :  { %v184_v18 = vpop.f32.mrf.mxu1 }
 0x114   :  { %v185_v19 = vadd.f32 %v285_v17, %v184_v18 }
 0x116   :  { %v188_v20 = vmax.f32 %v185_v19, 0.0 }
 0x118   :  { %207 = vmatpush.xpose.msra.mxu2 %v188_v20 }
 0x11b   :  { %v186_v22 = vpop.f32.mrf.mxu1  ;;  %208 = vmatmul.f32.vlgmr.msra.gmra.mxu2 %v189_v21 }
 0x19e   :  { %v209_v24 = vpop.f32.mrf.mxu2 }
 0x19f   :  { %v210_v25 = vadd.f32 %v209_v24, %v191_v23 }
 0x1a1   :  { %213 = vst.msk [vmem:[#allocation9] sm:$0x1] %vm212_vm1, %v210_v25 }
 0x1a2   :  { %224 = dma.vmem_to_hbm [thread:$0]  %s220_s23, 16, %s222_s4, [#allocation5]  }
 0x1a3   :  { %386 = dma.done.wait [#allocation5], 16  }
 0x1a4   :  { %387 = vsyncadd [#allocation5], 4294967280 }
 0x1a5   :  { %229 = vsyncpa [#allocation4], 1 }
 0x1a6   :  { %230 = vsyncpa [#allocation7], 1 }
 0x1a7   :  { %231 = vsyncpa [#allocation5], 1 }

</bundles_post_ra>
